<compile_context>
chip_gen: v7x
topology: tpu7x:2x2x1
jax: 0.10.0
libtpu: 0.0.40
codegen_flags: <defaults>
</compile_context>

<pallas_src>
import functools

import jax
import jax.numpy as jnp
from jax import lax
from jax.experimental import pallas as pl
from jax.experimental.pallas import tpu as pltpu

HIDDEN = 32          # hidden_size
DEPTH = 3            # depth
N_VEC = 8            # max_vector_num (sublane-friendly)
BATCH = 2
HALF = HIDDEN // 2
LN_EPS = 1e-5        # PyTorch LayerNorm default
MAX_TB = 512         # polylines per grid step (multiple of 8; ~0.5 MiB block)


def sub_graph_kernel(h_ref,                  # VMEM, [TB, N, H]
                     mask_ref,               # VMEM, [TB, N, 1] additive -1e4 mask
                     w_ref, b_ref, g_ref, beta_ref,   # stacked per-layer params
                     out_ref):               # VMEM, [TB, H]
    TB, N, H = h_ref.shape
    M = TB * N
    neg_mask = mask_ref[...]                               # [TB, N, 1]

    def layernorm_relu(x, l):
        # single-pass variance: E[x^2] - mu^2 (saves one full-tile pass)
        mu = jnp.mean(x, axis=-1, keepdims=True)
        var = jnp.mean(x * x, axis=-1, keepdims=True) - mu * mu
        xn = (x - mu) * lax.rsqrt(var + LN_EPS)
        return jnp.maximum(xn * g_ref[l] + beta_ref[l], 0.0)

    # ---- layer 0: full-width contraction on the flattened block -------------
    h2 = h_ref[...].reshape(M, H)                          # [TB*N, H]
    x = jnp.dot(h2, w_ref[0], preferred_element_type=jnp.float32) + b_ref[0]
    enc = layernorm_relu(x, 0).reshape(TB, N, HALF)        # [TB, N, H/2]
    pooled = jnp.max(enc + neg_mask, axis=1, keepdims=True)  # [TB, 1, H/2]

    # ---- layers 1..depth-1: split matmul, no concat --------------------------
    for l in range(1, DEPTH):
        x_big = jnp.dot(enc.reshape(M, HALF), w_ref[l, :HALF, :],
                        preferred_element_type=jnp.float32).reshape(TB, N, HALF)
        x_small = jnp.dot(pooled[:, 0, :], w_ref[l, HALF:, :],
                          preferred_element_type=jnp.float32) + b_ref[l]  # [TB, H/2]
        x = x_big + x_small[:, None, :]
        enc = layernorm_relu(x, l)                         # [TB, N, H/2]
        pooled = jnp.max(enc + neg_mask, axis=1, keepdims=True)

    # ---- final (unmasked) max over the vector axis of concat([enc, pooled]) --
    # max over a row-broadcast of pooled is pooled itself, so no [*, H] concat.
    out_ref[...] = jnp.concatenate(
        [jnp.max(enc, axis=1), pooled[:, 0, :]], axis=-1)  # [TB, H]


@functools.partial(jax.jit, static_argnames=("max_tb",))
def sub_graph_forward(hidden_states, lengths, params, max_tb=MAX_TB):
    """hidden_states: [B, N, H] f32, lengths: [B] int32 -> [B, H] f32."""
    B, N, H = hidden_states.shape
    W, b, g, beta = params

    # Additive mask, built once in the wrapper (rows >= length get -10000).
    mask = jnp.where(
        jnp.arange(N)[None, :, None] >= lengths[:, None, None],
        -10000.0, 0.0).astype(jnp.float32)                 # [B, N, 1]

    # Pick the polyline block size; pad B so it divides evenly.
    if B <= max_tb:
        TB, B_pad = B, B
    else:
        TB = max_tb
        B_pad = ((B + TB - 1) // TB) * TB
    if B_pad != B:
        pad = B_pad - B
        hidden_states = jnp.pad(hidden_states, ((0, pad), (0, 0), (0, 0)))
        mask = jnp.pad(mask, ((0, pad), (0, 0), (0, 0)))

    out = pl.pallas_call(
        sub_graph_kernel,
        out_shape=jax.ShapeDtypeStruct((B_pad, H), jnp.float32),
        grid=(B_pad // TB,),
        in_specs=[
            pl.BlockSpec((TB, N, H), lambda i: (i, 0, 0)),
            pl.BlockSpec((TB, N, 1), lambda i: (i, 0, 0)),
            pl.BlockSpec(W.shape, lambda i: (0, 0, 0)),
            pl.BlockSpec(b.shape, lambda i: (0, 0, 0)),
            pl.BlockSpec(g.shape, lambda i: (0, 0, 0)),
            pl.BlockSpec(beta.shape, lambda i: (0, 0, 0)),
        ],
        out_specs=pl.BlockSpec((TB, H), lambda i: (i, 0)),
        compiler_params=pltpu.CompilerParams(
            dimension_semantics=("parallel",)),
    )(hidden_states, mask, W, b, g, beta)
    return out[:B]


def sub_graph_reference(hidden_states, lengths, params):
    """Pure-JAX reference (concat form) of the same semantics."""
    W, b, g, beta = params
    B, N, H = hidden_states.shape
    mask = jnp.where(
        jnp.arange(N)[None, :, None] >= lengths[:, None, None], -10000.0, 0.0)
    h = hidden_states
    for l in range(W.shape[0]):
        x = h @ W[l] + b[l]
        mu = x.mean(-1, keepdims=True)
        var = ((x - mu) ** 2).mean(-1, keepdims=True)
        enc = jnp.maximum((x - mu) / jnp.sqrt(var + LN_EPS) * g[l] + beta[l], 0.0)
        pooled = jnp.max(enc + mask, axis=1, keepdims=True)
        h = jnp.concatenate([enc, jnp.broadcast_to(pooled, enc.shape)], axis=-1)
    return jnp.max(h, axis=1)


def make_params(key):
    kw, kb, kg, kbeta = jax.random.split(key, 4)
    W = jax.random.normal(kw, (DEPTH, HIDDEN, HALF), jnp.float32) * 0.1
    b = jax.random.normal(kb, (DEPTH, 1, HALF), jnp.float32) * 0.05
    g = 1.0 + 0.1 * jax.random.normal(kg, (DEPTH, 1, HALF), jnp.float32)
    beta = 0.05 * jax.random.normal(kbeta, (DEPTH, 1, HALF), jnp.float32)
    return W, b, g, beta


if __name__ == "__main__":
    key = jax.random.PRNGKey(0)
    k_x, k_p, k_x2, k_l2 = jax.random.split(key, 4)

    params = make_params(k_p)

    # Small canonical case: batch=2 polylines, 8 vectors, hidden=32.
    hidden_states = jax.random.normal(k_x, (BATCH, N_VEC, HIDDEN), jnp.float32)
    lengths = jnp.array([5, 8], dtype=jnp.int32)
    out = sub_graph_forward(hidden_states, lengths, params)
    out = jax.block_until_ready(out)
    ref = sub_graph_reference(hidden_states, lengths, params)
    assert out.shape == (BATCH, HIDDEN)
    assert jnp.allclose(out, ref, atol=1e-4, rtol=1e-4), "mismatch vs reference"

    # Second case exercises the multi-block grid + batch padding path.
    B2 = 20
    hs2 = jax.random.normal(k_x2, (B2, N_VEC, HIDDEN), jnp.float32)
    lens2 = jax.random.randint(k_l2, (B2,), 1, N_VEC + 1).astype(jnp.int32)
    out2 = jax.block_until_ready(sub_graph_forward(hs2, lens2, params, max_tb=8))
    ref2 = sub_graph_reference(hs2, lens2, params)
    assert out2.shape == (B2, HIDDEN)
    assert jnp.allclose(out2, ref2, atol=1e-4, rtol=1e-4), "mismatch vs reference (blocked)"

    print("KERNEL_OK")
</pallas_src>

<mosaic_0001>
module attributes {stable_mosaic.version = 11 : i64} {
  func.func @sub_graph_kernel(%arg0: i32, %arg1: memref<2x8x32xf32, #tpu.memory_space<vmem>>, %arg2: memref<2x8x1xf32, #tpu.memory_space<vmem>>, %arg3: memref<3x32x16xf32, #tpu.memory_space<vmem>>, %arg4: memref<3x1x16xf32, #tpu.memory_space<vmem>>, %arg5: memref<3x1x16xf32, #tpu.memory_space<vmem>>, %arg6: memref<3x1x16xf32, #tpu.memory_space<vmem>>, %arg7: memref<2x32xf32, #tpu.memory_space<vmem>>) attributes {dimension_semantics = [#tpu.dimension_semantics<parallel>], iteration_bounds = array<i64: 1>, scalar_prefetch = 0 : i64, scratch_operands = 0 : i64, tpu.core_type = #tpu.core_type<tc>, window_params = [{transform_indices = @transform_0, window_bounds = array<i64: 2, 8, 32>}, {transform_indices = @transform_1, window_bounds = array<i64: 2, 8, 1>}, {pipeline_mode = #tpu.pipeline_mode<synchronous>, transform_indices = @transform_2, window_bounds = array<i64: 3, 32, 16>}, {pipeline_mode = #tpu.pipeline_mode<synchronous>, transform_indices = @transform_3, window_bounds = array<i64: 3, 1, 16>}, {pipeline_mode = #tpu.pipeline_mode<synchronous>, transform_indices = @transform_4, window_bounds = array<i64: 3, 1, 16>}, {pipeline_mode = #tpu.pipeline_mode<synchronous>, transform_indices = @transform_5, window_bounds = array<i64: 3, 1, 16>}, {transform_indices = @transform_6, window_bounds = array<i64: 2, 32>}]} {
    %c0 = arith.constant 0 : index
    %c0_0 = arith.constant 0 : index
    %c0_1 = arith.constant 0 : index
    %0 = vector.load %arg2[%c0, %c0_0, %c0_1] : memref<2x8x1xf32, #tpu.memory_space<vmem>>, vector<2x8x1xf32>
    %c0_2 = arith.constant 0 : index
    %c0_3 = arith.constant 0 : index
    %c0_4 = arith.constant 0 : index
    %1 = vector.load %arg1[%c0_2, %c0_3, %c0_4] : memref<2x8x32xf32, #tpu.memory_space<vmem>>, vector<2x8x32xf32>
    %2 = vector.shape_cast %1 : vector<2x8x32xf32> to vector<16x32xf32>
    %c0_5 = arith.constant 0 : index
    %c0_6 = arith.constant 0 : index
    %c0_7 = arith.constant 0 : index
    %3 = vector.load %arg3[%c0_5, %c0_6, %c0_7] : memref<3x32x16xf32, #tpu.memory_space<vmem>>, vector<1x32x16xf32>
    %4 = vector.shape_cast %3 : vector<1x32x16xf32> to vector<32x16xf32>
    %cst = arith.constant dense<0.000000e+00> : vector<16x16xf32>
    %5 = tpu.matmul %2, %4, %cst {dimension_numbers = #tpu.dot_dimension_numbers<[1], [0], [0], [1], [0, 0, 1, 1], [], []>} : vector<16x32xf32>, vector<32x16xf32>, vector<16x16xf32> -> vector<16x16xf32>
    %c0_8 = arith.constant 0 : index
    %c0_9 = arith.constant 0 : index
    %c0_10 = arith.constant 0 : index
    %6 = vector.load %arg4[%c0_8, %c0_9, %c0_10] : memref<3x1x16xf32, #tpu.memory_space<vmem>>, vector<1x1x16xf32>
    %7 = vector.shape_cast %6 : vector<1x1x16xf32> to vector<1x16xf32>
    %8 = vector.broadcast %7 : vector<1x16xf32> to vector<16x16xf32>
    %9 = arith.addf %5, %8 : vector<16x16xf32>
    %cst_11 = arith.constant dense<0.000000e+00> : vector<16xf32>
    %10 = vector.multi_reduction <add>, %9, %cst_11 [1] : vector<16x16xf32> to vector<16xf32>
    %11 = vector.shape_cast %10 : vector<16xf32> to vector<16x1xf32>
    %cst_12 = arith.constant 1.600000e+01 : f32
    %12 = vector.broadcast %cst_12 : f32 to vector<16x1xf32>
    %13 = arith.divf %11, %12 : vector<16x1xf32>
    %14 = arith.mulf %9, %9 : vector<16x16xf32>
    %cst_13 = arith.constant dense<0.000000e+00> : vector<16xf32>
    %15 = vector.multi_reduction <add>, %14, %cst_13 [1] : vector<16x16xf32> to vector<16xf32>
    %16 = vector.shape_cast %15 : vector<16xf32> to vector<16x1xf32>
    %cst_14 = arith.constant 1.600000e+01 : f32
    %17 = vector.broadcast %cst_14 : f32 to vector<16x1xf32>
    %18 = arith.divf %16, %17 : vector<16x1xf32>
    %19 = arith.mulf %13, %13 : vector<16x1xf32>
    %20 = arith.subf %18, %19 : vector<16x1xf32>
    %21 = vector.broadcast %13 : vector<16x1xf32> to vector<16x16xf32>
    %22 = arith.subf %9, %21 : vector<16x16xf32>
    %cst_15 = arith.constant 9.99999974E-6 : f32
    %23 = vector.broadcast %cst_15 : f32 to vector<16x1xf32>
    %24 = arith.addf %20, %23 : vector<16x1xf32>
    %25 = math.rsqrt %24 : vector<16x1xf32>
    %26 = vector.broadcast %25 : vector<16x1xf32> to vector<16x16xf32>
    %27 = arith.mulf %22, %26 : vector<16x16xf32>
    %c0_16 = arith.constant 0 : index
    %c0_17 = arith.constant 0 : index
    %c0_18 = arith.constant 0 : index
    %28 = vector.load %arg5[%c0_16, %c0_17, %c0_18] : memref<3x1x16xf32, #tpu.memory_space<vmem>>, vector<1x1x16xf32>
    %29 = vector.shape_cast %28 : vector<1x1x16xf32> to vector<1x16xf32>
    %30 = vector.broadcast %29 : vector<1x16xf32> to vector<16x16xf32>
    %31 = arith.mulf %27, %30 : vector<16x16xf32>
    %c0_19 = arith.constant 0 : index
    %c0_20 = arith.constant 0 : index
    %c0_21 = arith.constant 0 : index
    %32 = vector.load %arg6[%c0_19, %c0_20, %c0_21] : memref<3x1x16xf32, #tpu.memory_space<vmem>>, vector<1x1x16xf32>
    %33 = vector.shape_cast %32 : vector<1x1x16xf32> to vector<1x16xf32>
    %34 = vector.broadcast %33 : vector<1x16xf32> to vector<16x16xf32>
    %35 = arith.addf %31, %34 : vector<16x16xf32>
    %cst_22 = arith.constant 0.000000e+00 : f32
    %36 = vector.broadcast %cst_22 : f32 to vector<16x16xf32>
    %37 = arith.maximumf %35, %36 : vector<16x16xf32>
    %38 = vector.shape_cast %37 : vector<16x16xf32> to vector<2x8x16xf32>
    %39 = vector.broadcast %0 : vector<2x8x1xf32> to vector<2x8x16xf32>
    %40 = arith.addf %38, %39 : vector<2x8x16xf32>
    %cst_23 = arith.constant dense<0xFF800000> : vector<2x16xf32>
    %41 = vector.multi_reduction <maximumf>, %40, %cst_23 [1] : vector<2x8x16xf32> to vector<2x16xf32>
    %42 = vector.shape_cast %41 : vector<2x16xf32> to vector<2x1x16xf32>
    %43 = vector.shape_cast %38 : vector<2x8x16xf32> to vector<16x16xf32>
    %c1 = arith.constant 1 : index
    %c0_24 = arith.constant 0 : index
    %c0_25 = arith.constant 0 : index
    %44 = vector.load %arg3[%c1, %c0_24, %c0_25] : memref<3x32x16xf32, #tpu.memory_space<vmem>>, vector<1x16x16xf32>
    %45 = vector.shape_cast %44 : vector<1x16x16xf32> to vector<16x16xf32>
    %cst_26 = arith.constant dense<0.000000e+00> : vector<16x16xf32>
    %46 = tpu.matmul %43, %45, %cst_26 {dimension_numbers = #tpu.dot_dimension_numbers<[1], [0], [0], [1], [0, 0, 1, 1], [], []>} : vector<16x16xf32>, vector<16x16xf32>, vector<16x16xf32> -> vector<16x16xf32>
    %47 = vector.shape_cast %46 : vector<16x16xf32> to vector<2x8x16xf32>
    %48 = vector.shape_cast %42 : vector<2x1x16xf32> to vector<2x16xf32>
    %c1_27 = arith.constant 1 : index
    %c16 = arith.constant 16 : index
    %c0_28 = arith.constant 0 : index
    %49 = vector.load %arg3[%c1_27, %c16, %c0_28] : memref<3x32x16xf32, #tpu.memory_space<vmem>>, vector<1x16x16xf32>
    %50 = vector.shape_cast %49 : vector<1x16x16xf32> to vector<16x16xf32>
    %cst_29 = arith.constant dense<0.000000e+00> : vector<2x16xf32>
    %51 = tpu.matmul %48, %50, %cst_29 {dimension_numbers = #tpu.dot_dimension_numbers<[1], [0], [0], [1], [0, 0, 1, 1], [], []>} : vector<2x16xf32>, vector<16x16xf32>, vector<2x16xf32> -> vector<2x16xf32>
    %c1_30 = arith.constant 1 : index
    %c0_31 = arith.constant 0 : index
    %c0_32 = arith.constant 0 : index
    %52 = vector.load %arg4[%c1_30, %c0_31, %c0_32] : memref<3x1x16xf32, #tpu.memory_space<vmem>>, vector<1x1x16xf32>
    %53 = vector.shape_cast %52 : vector<1x1x16xf32> to vector<1x16xf32>
    %54 = vector.broadcast %53 : vector<1x16xf32> to vector<2x16xf32>
    %55 = arith.addf %51, %54 : vector<2x16xf32>
    %56 = vector.shape_cast %55 : vector<2x16xf32> to vector<2x1x16xf32>
    %57 = vector.broadcast %56 : vector<2x1x16xf32> to vector<2x8x16xf32>
    %58 = arith.addf %47, %57 : vector<2x8x16xf32>
    %cst_33 = arith.constant dense<0.000000e+00> : vector<2x8xf32>
    %59 = vector.multi_reduction <add>, %58, %cst_33 [2] : vector<2x8x16xf32> to vector<2x8xf32>
    %60 = vector.shape_cast %59 : vector<2x8xf32> to vector<2x8x1xf32>
    %cst_34 = arith.constant 1.600000e+01 : f32
    %61 = vector.broadcast %cst_34 : f32 to vector<2x8x1xf32>
    %62 = arith.divf %60, %61 : vector<2x8x1xf32>
    %63 = arith.mulf %58, %58 : vector<2x8x16xf32>
    %cst_35 = arith.constant dense<0.000000e+00> : vector<2x8xf32>
    %64 = vector.multi_reduction <add>, %63, %cst_35 [2] : vector<2x8x16xf32> to vector<2x8xf32>
    %65 = vector.shape_cast %64 : vector<2x8xf32> to vector<2x8x1xf32>
    %cst_36 = arith.constant 1.600000e+01 : f32
    %66 = vector.broadcast %cst_36 : f32 to vector<2x8x1xf32>
    %67 = arith.divf %65, %66 : vector<2x8x1xf32>
    %68 = arith.mulf %62, %62 : vector<2x8x1xf32>
    %69 = arith.subf %67, %68 : vector<2x8x1xf32>
    %70 = vector.broadcast %62 : vector<2x8x1xf32> to vector<2x8x16xf32>
    %71 = arith.subf %58, %70 : vector<2x8x16xf32>
    %cst_37 = arith.constant 9.99999974E-6 : f32
    %72 = vector.broadcast %cst_37 : f32 to vector<2x8x1xf32>
    %73 = arith.addf %69, %72 : vector<2x8x1xf32>
    %74 = math.rsqrt %73 : vector<2x8x1xf32>
    %75 = vector.broadcast %74 : vector<2x8x1xf32> to vector<2x8x16xf32>
    %76 = arith.mulf %71, %75 : vector<2x8x16xf32>
    %c1_38 = arith.constant 1 : index
    %c0_39 = arith.constant 0 : index
    %c0_40 = arith.constant 0 : index
    %77 = vector.load %arg5[%c1_38, %c0_39, %c0_40] : memref<3x1x16xf32, #tpu.memory_space<vmem>>, vector<1x1x16xf32>
    %78 = vector.shape_cast %77 : vector<1x1x16xf32> to vector<1x16xf32>
    %79 = vector.shape_cast %78 : vector<1x16xf32> to vector<1x1x16xf32>
    %80 = vector.broadcast %79 : vector<1x1x16xf32> to vector<2x8x16xf32>
    %81 = arith.mulf %76, %80 : vector<2x8x16xf32>
    %c1_41 = arith.constant 1 : index
    %c0_42 = arith.constant 0 : index
    %c0_43 = arith.constant 0 : index
    %82 = vector.load %arg6[%c1_41, %c0_42, %c0_43] : memref<3x1x16xf32, #tpu.memory_space<vmem>>, vector<1x1x16xf32>
    %83 = vector.shape_cast %82 : vector<1x1x16xf32> to vector<1x16xf32>
    %84 = vector.shape_cast %83 : vector<1x16xf32> to vector<1x1x16xf32>
    %85 = vector.broadcast %84 : vector<1x1x16xf32> to vector<2x8x16xf32>
    %86 = arith.addf %81, %85 : vector<2x8x16xf32>
    %cst_44 = arith.constant 0.000000e+00 : f32
    %87 = vector.broadcast %cst_44 : f32 to vector<2x8x16xf32>
    %88 = arith.maximumf %86, %87 : vector<2x8x16xf32>
    %89 = vector.broadcast %0 : vector<2x8x1xf32> to vector<2x8x16xf32>
    %90 = arith.addf %88, %89 : vector<2x8x16xf32>
    %cst_45 = arith.constant dense<0xFF800000> : vector<2x16xf32>
    %91 = vector.multi_reduction <maximumf>, %90, %cst_45 [1] : vector<2x8x16xf32> to vector<2x16xf32>
    %92 = vector.shape_cast %91 : vector<2x16xf32> to vector<2x1x16xf32>
    %93 = vector.shape_cast %88 : vector<2x8x16xf32> to vector<16x16xf32>
    %c2 = arith.constant 2 : index
    %c0_46 = arith.constant 0 : index
    %c0_47 = arith.constant 0 : index
    %94 = vector.load %arg3[%c2, %c0_46, %c0_47] : memref<3x32x16xf32, #tpu.memory_space<vmem>>, vector<1x16x16xf32>
    %95 = vector.shape_cast %94 : vector<1x16x16xf32> to vector<16x16xf32>
    %cst_48 = arith.constant dense<0.000000e+00> : vector<16x16xf32>
    %96 = tpu.matmul %93, %95, %cst_48 {dimension_numbers = #tpu.dot_dimension_numbers<[1], [0], [0], [1], [0, 0, 1, 1], [], []>} : vector<16x16xf32>, vector<16x16xf32>, vector<16x16xf32> -> vector<16x16xf32>
    %97 = vector.shape_cast %96 : vector<16x16xf32> to vector<2x8x16xf32>
    %98 = vector.shape_cast %92 : vector<2x1x16xf32> to vector<2x16xf32>
    %c2_49 = arith.constant 2 : index
    %c16_50 = arith.constant 16 : index
    %c0_51 = arith.constant 0 : index
    %99 = vector.load %arg3[%c2_49, %c16_50, %c0_51] : memref<3x32x16xf32, #tpu.memory_space<vmem>>, vector<1x16x16xf32>
    %100 = vector.shape_cast %99 : vector<1x16x16xf32> to vector<16x16xf32>
    %cst_52 = arith.constant dense<0.000000e+00> : vector<2x16xf32>
    %101 = tpu.matmul %98, %100, %cst_52 {dimension_numbers = #tpu.dot_dimension_numbers<[1], [0], [0], [1], [0, 0, 1, 1], [], []>} : vector<2x16xf32>, vector<16x16xf32>, vector<2x16xf32> -> vector<2x16xf32>
    %c2_53 = arith.constant 2 : index
    %c0_54 = arith.constant 0 : index
    %c0_55 = arith.constant 0 : index
    %102 = vector.load %arg4[%c2_53, %c0_54, %c0_55] : memref<3x1x16xf32, #tpu.memory_space<vmem>>, vector<1x1x16xf32>
    %103 = vector.shape_cast %102 : vector<1x1x16xf32> to vector<1x16xf32>
    %104 = vector.broadcast %103 : vector<1x16xf32> to vector<2x16xf32>
    %105 = arith.addf %101, %104 : vector<2x16xf32>
    %106 = vector.shape_cast %105 : vector<2x16xf32> to vector<2x1x16xf32>
    %107 = vector.broadcast %106 : vector<2x1x16xf32> to vector<2x8x16xf32>
    %108 = arith.addf %97, %107 : vector<2x8x16xf32>
    %cst_56 = arith.constant dense<0.000000e+00> : vector<2x8xf32>
    %109 = vector.multi_reduction <add>, %108, %cst_56 [2] : vector<2x8x16xf32> to vector<2x8xf32>
    %110 = vector.shape_cast %109 : vector<2x8xf32> to vector<2x8x1xf32>
    %cst_57 = arith.constant 1.600000e+01 : f32
    %111 = vector.broadcast %cst_57 : f32 to vector<2x8x1xf32>
    %112 = arith.divf %110, %111 : vector<2x8x1xf32>
    %113 = arith.mulf %108, %108 : vector<2x8x16xf32>
    %cst_58 = arith.constant dense<0.000000e+00> : vector<2x8xf32>
    %114 = vector.multi_reduction <add>, %113, %cst_58 [2] : vector<2x8x16xf32> to vector<2x8xf32>
    %115 = vector.shape_cast %114 : vector<2x8xf32> to vector<2x8x1xf32>
    %cst_59 = arith.constant 1.600000e+01 : f32
    %116 = vector.broadcast %cst_59 : f32 to vector<2x8x1xf32>
    %117 = arith.divf %115, %116 : vector<2x8x1xf32>
    %118 = arith.mulf %112, %112 : vector<2x8x1xf32>
    %119 = arith.subf %117, %118 : vector<2x8x1xf32>
    %120 = vector.broadcast %112 : vector<2x8x1xf32> to vector<2x8x16xf32>
    %121 = arith.subf %108, %120 : vector<2x8x16xf32>
    %cst_60 = arith.constant 9.99999974E-6 : f32
    %122 = vector.broadcast %cst_60 : f32 to vector<2x8x1xf32>
    %123 = arith.addf %119, %122 : vector<2x8x1xf32>
    %124 = math.rsqrt %123 : vector<2x8x1xf32>
    %125 = vector.broadcast %124 : vector<2x8x1xf32> to vector<2x8x16xf32>
    %126 = arith.mulf %121, %125 : vector<2x8x16xf32>
    %c2_61 = arith.constant 2 : index
    %c0_62 = arith.constant 0 : index
    %c0_63 = arith.constant 0 : index
    %127 = vector.load %arg5[%c2_61, %c0_62, %c0_63] : memref<3x1x16xf32, #tpu.memory_space<vmem>>, vector<1x1x16xf32>
    %128 = vector.shape_cast %127 : vector<1x1x16xf32> to vector<1x16xf32>
    %129 = vector.shape_cast %128 : vector<1x16xf32> to vector<1x1x16xf32>
    %130 = vector.broadcast %129 : vector<1x1x16xf32> to vector<2x8x16xf32>
    %131 = arith.mulf %126, %130 : vector<2x8x16xf32>
    %c2_64 = arith.constant 2 : index
    %c0_65 = arith.constant 0 : index
    %c0_66 = arith.constant 0 : index
    %132 = vector.load %arg6[%c2_64, %c0_65, %c0_66] : memref<3x1x16xf32, #tpu.memory_space<vmem>>, vector<1x1x16xf32>
    %133 = vector.shape_cast %132 : vector<1x1x16xf32> to vector<1x16xf32>
    %134 = vector.shape_cast %133 : vector<1x16xf32> to vector<1x1x16xf32>
    %135 = vector.broadcast %134 : vector<1x1x16xf32> to vector<2x8x16xf32>
    %136 = arith.addf %131, %135 : vector<2x8x16xf32>
    %cst_67 = arith.constant 0.000000e+00 : f32
    %137 = vector.broadcast %cst_67 : f32 to vector<2x8x16xf32>
    %138 = arith.maximumf %136, %137 : vector<2x8x16xf32>
    %139 = vector.broadcast %0 : vector<2x8x1xf32> to vector<2x8x16xf32>
    %140 = arith.addf %138, %139 : vector<2x8x16xf32>
    %cst_68 = arith.constant dense<0xFF800000> : vector<2x16xf32>
    %141 = vector.multi_reduction <maximumf>, %140, %cst_68 [1] : vector<2x8x16xf32> to vector<2x16xf32>
    %142 = vector.shape_cast %141 : vector<2x16xf32> to vector<2x1x16xf32>
    %cst_69 = arith.constant dense<0xFF800000> : vector<2x16xf32>
    %143 = vector.multi_reduction <maximumf>, %138, %cst_69 [1] : vector<2x8x16xf32> to vector<2x16xf32>
    %144 = vector.shape_cast %142 : vector<2x1x16xf32> to vector<2x16xf32>
    %145 = tpu.concatenate %143, %144 in 1 : vector<2x16xf32>, vector<2x16xf32> -> vector<2x32xf32>
    %c0_70 = arith.constant 0 : index
    %c0_71 = arith.constant 0 : index
    %146 = vector.load %arg7[%c0_70, %c0_71] : memref<2x32xf32, #tpu.memory_space<vmem>>, vector<2x32xf32>
    tpu.vector_store %arg7[%c0_70, %c0_71], %145 {strides = array<i32>} : memref<2x32xf32, #tpu.memory_space<vmem>>, vector<2x32xf32>,
    return
  }
  func.func @transform_0(%arg0: i32) -> (i32, i32, i32) {
    %c0_i32 = arith.constant 0 : i32
    %c0_i32_0 = arith.constant 0 : i32
    %c0_i32_1 = arith.constant 0 : i32
    return %arg0, %c0_i32, %c0_i32_0 : i32, i32, i32
  }
  func.func @transform_1(%arg0: i32) -> (i32, i32, i32) {
    %c0_i32 = arith.constant 0 : i32
    %c0_i32_0 = arith.constant 0 : i32
    %c0_i32_1 = arith.constant 0 : i32
    return %arg0, %c0_i32, %c0_i32_0 : i32, i32, i32
  }
  func.func @transform_2(%arg0: i32) -> (i32, i32, i32) {
    %c0_i32 = arith.constant 0 : i32
    %c0_i32_0 = arith.constant 0 : i32
    %c0_i32_1 = arith.constant 0 : i32
    %c0_i32_2 = arith.constant 0 : i32
    return %c0_i32, %c0_i32_0, %c0_i32_1 : i32, i32, i32
  }
  func.func @transform_3(%arg0: i32) -> (i32, i32, i32) {
    %c0_i32 = arith.constant 0 : i32
    %c0_i32_0 = arith.constant 0 : i32
    %c0_i32_1 = arith.constant 0 : i32
    %c0_i32_2 = arith.constant 0 : i32
    return %c0_i32, %c0_i32_0, %c0_i32_1 : i32, i32, i32
  }
  func.func @transform_4(%arg0: i32) -> (i32, i32, i32) {
    %c0_i32 = arith.constant 0 : i32
    %c0_i32_0 = arith.constant 0 : i32
    %c0_i32_1 = arith.constant 0 : i32
    %c0_i32_2 = arith.constant 0 : i32
    return %c0_i32, %c0_i32_0, %c0_i32_1 : i32, i32, i32
  }
  func.func @transform_5(%arg0: i32) -> (i32, i32, i32) {
    %c0_i32 = arith.constant 0 : i32
    %c0_i32_0 = arith.constant 0 : i32
    %c0_i32_1 = arith.constant 0 : i32
    %c0_i32_2 = arith.constant 0 : i32
    return %c0_i32, %c0_i32_0, %c0_i32_1 : i32, i32, i32
  }
  func.func @transform_6(%arg0: i32) -> (i32, i32) {
    %c0_i32 = arith.constant 0 : i32
    %c0_i32_0 = arith.constant 0 : i32
    return %arg0, %c0_i32 : i32, i32
  }
}

</mosaic_0001>

<bundles_post_ra>
// kernel: sub_graph_forward.1
= control target key start
LH: loop header
LB: loop body
LE: loop exit
PB: predicated region body
PF: predicated region fallthrough
CT: control target
= control target key end

     0   :  { %vm39_vm0 = vcmask 261120   ;;  %s1128_s0 = inlined_call_operand.vmem [shape: f32[2,8,32], index: 0, kind: input, shape index: {}]   ;;  %s1129_s1 = inlined_call_operand.vmem [shape: f32[2,8,1], index: 1, kind: input, shape index: {}]   ;;  %s1130_s2 = inlined_call_operand.vmem [shape: f32[3,32,16], index: 2, kind: input, shape index: {}]   ;;  %s1131_s3 = inlined_call_operand.vmem [shape: f32[3,1,16], index: 3, kind: input, shape index: {}]   ;;  %s1132_s4 = inlined_call_operand.vmem [shape: f32[3,1,16], index: 4, kind: input, shape index: {}]   ;;  %s1133_s5 = inlined_call_operand.vmem [shape: f32[3,1,16], index: 5, kind: input, shape index: {}]   ;;  %s1134_s6 = inlined_call_operand.hbm [shape: f32[2,32], index: 6, kind: output, shape index: {}]  }
   0x1   :  { %v28_v0 = vld [vmem:[%s1130_s2] sm:$0xff]  ;;  %v29_v1 = vld [vmem:[%s1130_s2 + $0x8] sm:$0xff]  ;;  %v30_v2 = vld [vmem:[%s1130_s2 + $0x10] sm:$0xff] }
   0x2   :  { %v875_v3 = vpack.c.bf16 %v29_v1, %v28_v0  ;;  %v31_v4 = vld [vmem:[%s1130_s2 + $0x18] sm:$0xff]  ;;  %v26_v5 = vld [vmem:[%s1128_s0] sm:$0xff] }
   0x3   :  { %v879_v6 = vpack.c.bf16 %v31_v4, %v30_v2  ;;  %844 = vmatprep.mubr.msk.f32.mxu0 %vm39_vm0, %v26_v5 }
   0x4   :  { %11 = vsyncpa [#allocation3], 0  ;;  %876 = vmatprep.subr.bf16.mxu0 %v875_v3  ;;  %v27_v7 = vld [vmem:[%s1128_s0 + $0x8] sm:$0xff]  ;;  %v942_v8 = vmov 0   ;;  %v785_v9 = vld [vmem:[%s1131_s3] ss:$0 sm:$0xff] }
   0x5   :  { %878 = vmatpush3.bf16.msra.mxu0 %v875_v3  ;;  %904 = vset.pattern.permute.xlu0 %v942_v8  ;;  %vm121_vm1 = vcmask 130048   ;;  %v25_v20 = vld [vmem:[%s1129_s1 + $0x8] sm:$0xff]  ;;  %v24_v21 = vld [vmem:[%s1129_s1] sm:$0xff]  ;;  %v943_v25 = vmov 0.0|0.0   ;;  %v794_v50 = vld [vmem:[%s1130_s2 + $0x30] sm:$0xff]  ;;  %vm944_vm2 = vmmov 0  }
   0x6   :  { %880 = vmatprep.subr.bf16.mxu0 %v879_v6  ;;  %905 = vset.pattern.permute.xlu1 %v942_v8  ;;  %v790_v22 = vld [vmem:[%s1130_s2 + $0x20] sm:$0xff]  ;;  %v791_v23 = vld [vmem:[%s1130_s2 + $0x28] sm:$0xff]  ;;  %v795_v51 = vld [vmem:[%s1130_s2 + $0x38] sm:$0xff]  ;;  %v945_v62 = vmov 0.0   ;;  %vm295_vm3 = vcmask 1041409   ;;  %vm769_vm4 = vcmask 254976  }
   0x7   :  { %v883_v24 = vpack.c.bf16 %v791_v23, %v790_v22  ;;  %v788_v43 = vld [vmem:[%s1132_s4] ss:$0 sm:$0xff]  ;;  %v888_v57 = vpack.c.bf16 %v795_v51, %v794_v50 }
   0x8   :  { %v789_v47 = vld [vmem:[%s1133_s5] ss:$0 sm:$0xff] }
   0x9   :  { %882 = vmatpush3.bf16.msra.mxu0 %v879_v6  ;;  %884 = vmatprep.subr.bf16.mxu1 %v883_v24 }
   0xa   :  { %886 = vmatpush3.bf16.msra.mxu1 %v883_v24 }
   0xb   :  { %887 = vmatprep.subr.bf16.mxu1 %v943_v25 }
   0xc   :  { %845 = vmatmul.mubr.msk.f32.vlgmr.msra.gmra.mrb[0].mxu0 %vm39_vm0, %v27_v7 }
  0xdf   :  { %v846_v10 = vpop.f32.mrb[0].mxu0 }
  0xe0   :  { %v118_v11 = vadd.f32 %v846_v10, %v785_v9  ;;  %v112_v12 = vpop.f32.mrb[1].mxu0 }
  0xe1   :  { %v113_v13 = vadd.f32 %v785_v9, %v112_v12 }
  0xe2   :  { %v132_v14 = vmul.f32 %v118_v11, %v118_v11  ;;  %v125_v18 = vsel %vm121_vm1, %v118_v11, 0.0 }
  0xe3   :  { %v122_v15 = vsel %vm121_vm1, %v113_v13, 0.0  ;;  %v131_v17 = vmul.f32 %v113_v13, %v113_v13 }
  0xe4   :  { %123 = vadd.xlane.f32.xlu0 %v122_v15  ;;  %v136_v16 = vsel %vm121_vm1, %v132_v14, 0.0  ;;  %v946_v15 = vmov 1966171168  }
  0xe5   :  { %137 = vadd.xlane.f32.xlu1 %v136_v16  ;;  %v133_v19 = vsel %vm121_vm1, %v131_v17, 0.0  ;;  %v371_v16 = vunpack.c.l.s4 %v946_v15  ;;  %v373_v17 = vlaneseq }
  0xe8   :  { %126 = vadd.xlane.f32.xlu0 %v125_v18  ;;  %v372_v18 = vunpack.c.0.s8 %v371_v16 }
  0xe9   :  { %134 = vadd.xlane.f32.xlu1 %v133_v19  ;;  %v374_v19 = vshrl.u32 %v373_v17, 7 }
  0xfa   :  { %180 = vperm.xlu1 %905, %v25_v20   ;;  %v797_v20 = vld [vmem:[%s1131_s3 + $0x1] ss:$0 sm:$0xff] }
  0xfe   :  { %175 = vperm.xlu0 %904, %v24_v21   ;;  %v1050_v21 = vsub.s32 %v372_v18, %v374_v19 }
 0x171   :  { %v124_v26 = vpop.xlane.xlu0 %123 }
 0x172   :  { %v138_v27 = vpop.xlane.xlu1 %137  ;;  %v129_v28 = vmul.f32 0.0625, %v124_v26  ;;  %v1053_v26 = vsub.s32 0, %v374_v19 }
 0x173   :  { %v140_v34 = vmul.f32 0.0625, %v138_v27 }
 0x174   :  { %v141_v32 = vmul.f32 %v129_v28, %v129_v28  ;;  %v145_v40 = vsub.f32 %v113_v13, %v129_v28 }
 0x175   :  { %v127_v29 = vpop.xlane.xlu0 %126 }
 0x176   :  { %v130_v30 = vmul.f32 0.0625, %v127_v29  ;;  %v135_v31 = vpop.xlane.xlu1 %134 }
 0x177   :  { %v139_v33 = vmul.f32 0.0625, %v135_v31 }
 0x178   :  { %v142_v35 = vmul.f32 %v130_v30, %v130_v30  ;;  %v146_v42 = vsub.f32 %v118_v11, %v130_v30 }
 0x179   :  { %v143_v36 = vsub.f32 %v139_v33, %v141_v32 }
 0x17a   :  { %v144_v37 = vsub.f32 %v140_v34, %v142_v35  ;;  %v1035_v56 = vpop.permute.xlu1 %180 }
 0x17b   :  { %v147_v38 = vadd.f32 1e-05, %v143_v36 }
 0x17c   :  { %v148_v39 = vadd.f32 1e-05, %v144_v37 }
 0x17d   :  { %906 = vrsqrt.f32 %v147_v38  ;;  %v1033_v53 = vpop.permute.xlu0 %175 }
 0x17e   :  { %908 = vrsqrt.f32 %v148_v39 }
 0x187   :  { %v907_v41 = vpop.eup %906 }
 0x188   :  { %v909_v44 = vpop.eup %908  ;;  %v151_v45 = vmul.f32 %v907_v41, %v145_v40  ;;  %v803_v40 = vld [vmem:[%s1130_s2 + $0x40] sm:$0xff]  ;;  %v804_v41 = vld [vmem:[%s1130_s2 + $0x48] sm:$0xff] }
 0x189   :  { %v152_v46 = vmul.f32 %v909_v44, %v146_v42  ;;  %v890_v42 = vpack.c.bf16 %v804_v41, %v803_v40  ;;  %v808_v44 = vld [vmem:[%s1130_s2 + $0x58] sm:$0xff] }
 0x18a   :  { %v160_v48 = vmul.f32 %v788_v43, %v151_v45 }
 0x18b   :  { %v161_v49 = vmul.f32 %v788_v43, %v152_v46  ;;  %891 = vmatprep.subr.bf16.mxu0 %v890_v42  ;;  %v807_v43 = vld [vmem:[%s1130_s2 + $0x50] sm:$0xff] }
 0x18c   :  { %v169_v52 = vadd.f32 %v789_v47, %v160_v48  ;;  %893 = vmatpush3.bf16.msra.mxu0 %v890_v42  ;;  %v895_v45 = vpack.c.bf16 %v808_v44, %v807_v43 }
 0x18d   :  { %v170_v54 = vadd.f32 %v789_v47, %v161_v49 }
 0x18e   :  { %v171_v55 = vmax.f32 %v169_v52, 0.0 }
 0x18f   :  { %v172_v58 = vmax.f32 %v170_v54, 0.0 }
 0x190   :  { %v183_v59 = vadd.f32 %v1033_v53, %v171_v55  ;;  %851 = vmatprep.mubr.msk.f32.mxu1 %vm121_vm1, %v171_v55 }
 0x191   :  { %v184_v60 = vadd.f32 %v1035_v56, %v172_v58  ;;  %852 = vmatmul.mubr.msk.f32.vlgmr.msra.gmra.mrb[0].mxu1 %vm121_vm1, %v172_v58 }
 0x192   :  { %v185_v61 = vsel %vm121_vm1, %v183_v59, -inf  ;;  %889 = vmatpush3.bf16.msra.mxu1 %v888_v57  ;;  %858 = vmatprep.mubr.msk.f32.mxu1 %vm944_vm2, %v945_v62 }
 0x193   :  { %v186_v63 = vrot.slane %v185_v61, 4  ;;  %v192_v0 = vsel %vm121_vm1, %v184_v60, -inf  ;;  %894 = vmatprep.subr.bf16.mxu1 %v943_v25 }
 0x194   :  { %v193_v1 = vrot.slane %v192_v0, 4 }
 0x195   :  { %v187_v2 = vmax.f32 %v185_v61, %v186_v63 }
 0x196   :  { %v194_v3 = vmax.f32 %v192_v0, %v193_v1  ;;  %v800_v0 = vld [vmem:[%s1132_s4 + $0x1] ss:$0 sm:$0xff] }
 0x197   :  { %v188_v4 = vrot.slane %v187_v2, 2 }
 0x198   :  { %v195_v5 = vrot.slane %v194_v3, 2 }
 0x199   :  { %v189_v6 = vmax.f32 %v187_v2, %v188_v4  ;;  %v802_v2 = vld [vmem:[%s1133_s5 + $0x1] ss:$0 sm:$0xff] }
 0x19a   :  { %v196_v7 = vmax.f32 %v194_v3, %v195_v5 }
 0x19b   :  { %v190_v8 = vrot.slane %v189_v6, 1 }
 0x19c   :  { %v197_v9 = vrot.slane %v196_v7, 1 }
 0x19d   :  { %v191_v10 = vmax.f32 %v189_v6, %v190_v8 }
 0x19e   :  { %v198_v11 = vmax.f32 %v196_v7, %v197_v9 }
 0x1a0   :  { %v296_v12 = vsel %vm295_vm3, %v198_v11, %v191_v10 }
 0x1a1   :  { %859 = vmatmul.mubr.msk.f32.vlgmr.msra.gmra.mrb[2].mxu1 %vm121_vm1, %v296_v12 }
 0x1a2   :  { %872 = vmatprep.mubr.msk.f32.mxu1 %vm944_vm2, %v945_v62  ;;  %896 = vmatpush3.bf16.msra.mxu1 %v895_v45 }
 0x264   :  { %v853_v13 = vpop.f32.mrb[0].mxu1 }
 0x265   :  { %v274_v14 = vpop.f32.mrb[1].mxu1 }
 0x274   :  { %v365_v22 = vpop.f32.mrb[2].mxu1 }
 0x275   :  { %v366_v23 = vadd.f32 %v797_v20, %v365_v22  ;;  %v860_v24 = vpop.f32.mrb[3].mxu1 }
 0x277   :  { %v376_v25 = vrot.slane %v366_v23, %v1050_v21 }
 0x279   :  { %v377_v27 = vcombine.high %v376_v25, %v376_v25  ;;  %v384_v28 = vrot.slane %v376_v25, %v1050_v21 }
 0x27b   :  { %v391_v29 = vrot.slane %v377_v27, %v1050_v21  ;;  %v395_v30 = vrot.slane %v384_v28, %v1053_v26 }
 0x27d   :  { %v402_v31 = vadd.f32 %v395_v30, %v274_v14  ;;  %v399_v32 = vrot.slane %v391_v29, %v1053_v26 }
 0x27f   :  { %v404_v33 = vsel %vm121_vm1, %v402_v31, 0.0  ;;  %v403_v34 = vadd.f32 %v853_v13, %v399_v32  ;;  %v412_v35 = vmul.f32 %v402_v31, %v402_v31 }
 0x280   :  { %405 = vadd.xlane.f32.xlu1 %v404_v33  ;;  %v810_v33 = vld [vmem:[%s1131_s3 + $0x2] ss:$0 sm:$0xff] }
 0x281   :  { %v407_v36 = vsel %vm121_vm1, %v403_v34, 0.0  ;;  %v414_v37 = vsel %vm121_vm1, %v412_v35, 0.0  ;;  %v413_v38 = vmul.f32 %v403_v34, %v403_v34 }
 0x282   :  { %408 = vadd.xlane.f32.xlu0 %v407_v36 }
 0x283   :  { %v417_v39 = vsel %vm121_vm1, %v413_v38, 0.0 }
 0x284   :  { %415 = vadd.xlane.f32.xlu1 %v414_v37 }
 0x288   :  { %418 = vadd.xlane.f32.xlu1 %v417_v39 }
 0x30d   :  { %v406_v46 = vpop.xlane.xlu1 %405 }
 0x30e   :  { %v410_v47 = vmul.f32 0.0625, %v406_v46 }
 0x30f   :  { %v409_v48 = vpop.xlane.xlu0 %408 }
 0x310   :  { %v422_v50 = vmul.f32 %v410_v47, %v410_v47  ;;  %v411_v51 = vmul.f32 0.0625, %v409_v48  ;;  %v426_v62 = vsub.f32 %v402_v31, %v410_v47 }
 0x311   :  { %v416_v49 = vpop.xlane.xlu1 %415 }
 0x312   :  { %v420_v52 = vmul.f32 0.0625, %v416_v49  ;;  %v423_v57 = vmul.f32 %v411_v51, %v411_v51  ;;  %v427_v3 = vsub.f32 %v403_v34, %v411_v51 }
 0x314   :  { %v424_v54 = vsub.f32 %v420_v52, %v422_v50 }
 0x315   :  { %v419_v55 = vpop.xlane.xlu1 %418 }
 0x316   :  { %v428_v58 = vadd.f32 1e-05, %v424_v54  ;;  %v421_v59 = vmul.f32 0.0625, %v419_v55 }
 0x318   :  { %910 = vrsqrt.f32 %v428_v58  ;;  %v425_v60 = vsub.f32 %v421_v59, %v423_v57 }
 0x31a   :  { %v429_v61 = vadd.f32 1e-05, %v425_v60 }
 0x31c   :  { %912 = vrsqrt.f32 %v429_v61 }
 0x322   :  { %v911_v63 = vpop.eup %910 }
 0x323   :  { %v432_v1 = vmul.f32 %v911_v63, %v426_v62 }
 0x325   :  { %v442_v4 = vmul.f32 %v800_v0, %v432_v1 }
 0x326   :  { %v913_v5 = vpop.eup %912 }
 0x327   :  { %v433_v6 = vmul.f32 %v913_v5, %v427_v3  ;;  %v452_v7 = vadd.f32 %v802_v2, %v442_v4  ;;  %v813_v3 = vld [vmem:[%s1132_s4 + $0x2] ss:$0 sm:$0xff]  ;;  %s947_s4 = smov 16  }
 0x328   :  { %v815_v5 = vld [vmem:[%s1133_s5 + $0x2] ss:$0 sm:$0xff]  ;;  %s948_s5 = smov [#allocation2]  }
 0x329   :  { %v443_v8 = vmul.f32 %v800_v0, %v433_v6  ;;  %v454_v9 = vmax.f32 %v452_v7, 0.0  ;;  %s777_s1 = sshll.u32 %s948_s5, 4  ;;  %s778_s1 = int_to_ptr.vmem [resolvable:$true] %s777_s1 }
 0x32a   :  { %s918_s18 = scalar_lea.vmem %s778_s1, 32  ;;  %p923_p1 = scmp.lt.s32.totalorder %s778_s1, %s778_s1 }
 0x32b   :  { %v453_v10 = vadd.f32 %v802_v2, %v443_v8  ;;  %v456_v11 = vadd.f32 %v454_v9, %v1033_v53  ;;  %865 = vmatprep.mubr.msk.f32.mxu0 %vm121_vm1, %v454_v9  ;;  %p919_p0 = scmp.ne.s32.totalorder %s778_s1, %s918_s18  ;;  %p924_p2 = scmp.lt.s32.totalorder %s918_s18, %s918_s18 }
 0x32d   :  { %v455_v12 = vmax.f32 %v453_v10, 0.0  ;;  %v458_v13 = vsel %vm121_vm1, %v456_v11, -inf  ;;  %p925_p3 = por %p924_p2, %p923_p1 }
 0x32e   :  { %v459_v14 = vrot.slane %v458_v13, 4 }
 0x32f   :  { %v457_v15 = vadd.f32 %v455_v12, %v1035_v56  ;;  %866 = vmatmul.mubr.msk.f32.vlgmr.msra.gmra.mrb[2].mxu0 %vm121_vm1, %v455_v12  ;;  %p926_p4 = pnand %p925_p3, %p919_p0 }
 0x330   :  { %v460_v16 = vmax.f32 %v458_v13, %v459_v14 }
 0x331   :  { %v465_v17 = vsel %vm121_vm1, %v457_v15, -inf }
 0x332   :  { %v466_v18 = vrot.slane %v465_v17, 4  ;;  %v461_v19 = vrot.slane %v460_v16, 2 }
 0x334   :  { %v462_v20 = vmax.f32 %v460_v16, %v461_v19  ;;  %v467_v22 = vmax.f32 %v465_v17, %v466_v18 }
 0x336   :  { %v468_v23 = vrot.slane %v467_v22, 2  ;;  %v463_v24 = vrot.slane %v462_v20, 1 }
 0x338   :  { %v469_v25 = vmax.f32 %v467_v22, %v468_v23  ;;  %v464_v28 = vmax.f32 %v462_v20, %v463_v24 }
 0x33a   :  { %v470_v27 = vrot.slane %v469_v25, 1 }
 0x33c   :  { %v471_v29 = vmax.f32 %v469_v25, %v470_v27 }
 0x33e   :  { %v568_v30 = vsel %vm295_vm3, %v471_v29, %v464_v28 }
 0x33f   :  { %873 = vmatmul.mubr.msk.f32.vlgmr.msra.gmra.mrb[4].mxu1 %vm121_vm1, %v568_v30 }
 0x402   :  { %v867_v31 = vpop.f32.mrb[2].mxu0 }
 0x403   :  { %v547_v32 = vpop.f32.mrb[3].mxu0 }
 0x412   :  { %v637_v34 = vpop.f32.mrb[4].mxu1 }
 0x413   :  { %v638_v35 = vadd.f32 %v810_v33, %v637_v34  ;;  %v874_v36 = vpop.f32.mrb[5].mxu1 }
 0x415   :  { %v648_v37 = vrot.slane %v638_v35, %v1050_v21 }
 0x417   :  { %v649_v38 = vcombine.high %v648_v37, %v648_v37  ;;  %v656_v39 = vrot.slane %v648_v37, %v1050_v21 }
 0x419   :  { %v663_v40 = vrot.slane %v649_v38, %v1050_v21  ;;  %v667_v41 = vrot.slane %v656_v39, %v1053_v26 }
 0x41b   :  { %v674_v42 = vadd.f32 %v667_v41, %v547_v32  ;;  %v671_v43 = vrot.slane %v663_v40, %v1053_v26 }
 0x41d   :  { %v676_v44 = vsel %vm121_vm1, %v674_v42, 0.0  ;;  %v675_v45 = vadd.f32 %v867_v31, %v671_v43  ;;  %v684_v47 = vmul.f32 %v674_v42, %v674_v42 }
 0x41e   :  { %677 = vadd.xlane.f32.xlu1 %v676_v44 }
 0x41f   :  { %v679_v46 = vsel %vm121_vm1, %v675_v45, 0.0  ;;  %v686_v48 = vsel %vm121_vm1, %v684_v47, 0.0  ;;  %v685_v49 = vmul.f32 %v675_v45, %v675_v45 }
 0x421   :  { %v689_v50 = vsel %vm121_vm1, %v685_v49, 0.0 }
 0x422   :  { %680 = vadd.xlane.f32.xlu1 %v679_v46 }
 0x426   :  { %687 = vadd.xlane.f32.xlu1 %v686_v48 }
 0x42a   :  { %690 = vadd.xlane.f32.xlu1 %v689_v50 }
 0x4ab   :  { %v678_v21 = vpop.xlane.xlu1 %677 }
 0x4ac   :  { %v682_v52 = vmul.f32 0.0625, %v678_v21 }
 0x4ae   :  { %v694_v26 = vmul.f32 %v682_v52, %v682_v52  ;;  %v698_v1 = vsub.f32 %v674_v42, %v682_v52 }
 0x4af   :  { %v681_v51 = vpop.xlane.xlu1 %680 }
 0x4b0   :  { %v683_v55 = vmul.f32 0.0625, %v681_v51 }
 0x4b2   :  { %v695_v60 = vmul.f32 %v683_v55, %v683_v55  ;;  %v699_v6 = vsub.f32 %v675_v45, %v683_v55 }
 0x4b3   :  { %v688_v54 = vpop.xlane.xlu1 %687 }
 0x4b4   :  { %v692_v57 = vmul.f32 0.0625, %v688_v54 }
 0x4b6   :  { %v696_v58 = vsub.f32 %v692_v57, %v694_v26 }
 0x4b7   :  { %v691_v59 = vpop.xlane.xlu1 %690 }
 0x4b8   :  { %v700_v61 = vadd.f32 1e-05, %v696_v58  ;;  %v693_v62 = vmul.f32 0.0625, %v691_v59 }
 0x4ba   :  { %914 = vrsqrt.f32 %v700_v61  ;;  %v697_v63 = vsub.f32 %v693_v62, %v695_v60 }
 0x4bc   :  { %v701_v0 = vadd.f32 1e-05, %v697_v63 }
 0x4be   :  { %916 = vrsqrt.f32 %v701_v0 }
 0x4c4   :  { %v915_v2 = vpop.eup %914 }
 0x4c5   :  { %v704_v4 = vmul.f32 %v915_v2, %v698_v1 }
 0x4c7   :  { %v714_v7 = vmul.f32 %v813_v3, %v704_v4 }
 0x4c8   :  { %v917_v8 = vpop.eup %916 }
 0x4c9   :  { %v705_v9 = vmul.f32 %v917_v8, %v699_v6  ;;  %v724_v10 = vadd.f32 %v815_v5, %v714_v7 }
 0x4cb   :  { %v715_v11 = vmul.f32 %v813_v3, %v705_v9  ;;  %v726_v12 = vmax.f32 %v724_v10, 0.0 }
 0x4cd   :  { %v725_v13 = vadd.f32 %v815_v5, %v715_v11  ;;  %v728_v14 = vadd.f32 %v726_v12, %v1033_v53  ;;  %v744_v15 = vsel %vm121_vm1, %v726_v12, -inf }
 0x4ce   :  { %v745_v16 = vrot.slane %v744_v15, 4 }
 0x4cf   :  { %v727_v17 = vmax.f32 %v725_v13, 0.0  ;;  %v730_v18 = vsel %vm121_vm1, %v728_v14, -inf }
 0x4d0   :  { %v731_v19 = vrot.slane %v730_v18, 4  ;;  %v746_v20 = vmax.f32 %v744_v15, %v745_v16 }
 0x4d1   :  { %v729_v22 = vadd.f32 %v727_v17, %v1035_v56  ;;  %v751_v23 = vsel %vm121_vm1, %v727_v17, -inf }
 0x4d2   :  { %v732_v24 = vmax.f32 %v730_v18, %v731_v19  ;;  %v747_v25 = vrot.slane %v746_v20, 2  ;;  %v752_v27 = vrot.slane %v751_v23, 4 }
 0x4d3   :  { %v737_v28 = vsel %vm121_vm1, %v729_v22, -inf }
 0x4d4   :  { %v733_v29 = vrot.slane %v732_v24, 2  ;;  %v738_v30 = vrot.slane %v737_v28, 4  ;;  %v748_v53 = vmax.f32 %v746_v20, %v747_v25  ;;  %v753_v31 = vmax.f32 %v751_v23, %v752_v27 }
 0x4d6   :  { %v734_v32 = vmax.f32 %v732_v24, %v733_v29  ;;  %v739_v33 = vmax.f32 %v737_v28, %v738_v30  ;;  %v754_v34 = vrot.slane %v753_v31, 2  ;;  %v749_v36 = vrot.slane %v748_v53, 1 }
 0x4d8   :  { %v740_v35 = vrot.slane %v739_v33, 2  ;;  %v755_v37 = vmax.f32 %v753_v31, %v754_v34  ;;  %v735_v38 = vrot.slane %v734_v32, 1  ;;  %v750_v41 = vmax.f32 %v748_v53, %v749_v36 }
 0x4da   :  { %v741_v39 = vmax.f32 %v739_v33, %v740_v35  ;;  %v756_v56 = vrot.slane %v755_v37, 1  ;;  %v736_v43 = vmax.f32 %v734_v32, %v735_v38 }
 0x4dc   :  { %v742_v40 = vrot.slane %v741_v39, 1  ;;  %v757_v42 = vmax.f32 %v755_v37, %v756_v56 }
 0x4de   :  { %v743_v44 = vmax.f32 %v741_v39, %v742_v40  ;;  %v760_v45 = vsel %vm295_vm3, %v757_v42, %v750_v41 }
 0x4e0   :  { %v764_v46 = vsel %vm295_vm3, %v743_v44, %v736_v43 }
 0x4e1   :  { %765 = vrot.lane.b32.xlu0 %v764_v46, %s947_s4 }
 0x553   :  { %v766_v47 = vpop.permute.xlu0 %765 }
 0x554   :  { %v768_v48 = vsel %vm121_vm1, %v760_v45, %v766_v47 }
 0x555   :  { %770 = vst.msk [vmem:[#allocation2] sm:$0x3] %vm769_vm4, %v768_v48 }
 0x556   :  { %929 = shalt.err (!%p926_p4)
}
 0x557   :  { %s930_s21 = scalar_lea.hbm %s1134_s6, 32 }
 0x558   :  { %p931_p5 = scmp.ne.s32.totalorder %s1134_s6, %s930_s21  ;;  %p934_p6 = scmp.lt.u32.totalorder %s930_s21, %s1134_s6 }
 0x55a   :  { %p936_p7 = pnand %p934_p6, %p931_p5 }
 0x55c   :  { %939 = shalt.err (!%p936_p7)
}
 0x55d   :  { %780 = dma.vmem_to_hbm [thread:$0]  %s778_s1, 32, %s1134_s6, [#allocation3]  }
 0x55e   :  { %940 = dma.done.wait [#allocation3], 32  }
 0x55f   :  { %941 = vsyncadd [#allocation3], 4294967264 }
 0x560   :  { %784 = vsyncpa [#allocation3], 1 }

</bundles_post_ra>
